<compile_context>
chip_gen: v7x
topology: tpu7x:2x2x1
jax: 0.10.0
libtpu: 0.0.40
codegen_flags: <defaults>
</compile_context>

<pallas_src>
import functools

import jax
import jax.numpy as jnp
from jax.experimental import pallas as pl
from jax.experimental.pallas import tpu as pltpu


# ----------------------------------------------------------------------------
# Pallas kernel: the BilinearNet.forward hot path (pure HBM-write-bound)
# ----------------------------------------------------------------------------
def _bilinear_forward_kernel(ut_ref, it_ref, bias_ref, out_ref, *, row_tile):
    # ut_ref, it_ref : (D, TC)      transposed user/item slabs for output columns
    # bias_ref       : (B_pad_r, 1) resident folded bias (user_bias + item_bias)
    # out_ref        : (TR, TC)     output tile
    #
    # Sublane-axis reduce (D on sublanes, output columns on lanes): pure VPU
    # work whose (1, TC) result is already lane-resident in output layout.
    # Recomputed every step (cheap; hidden under the output writeback DMA).
    dot = jnp.sum(ut_ref[...] * it_ref[...], axis=0, keepdims=True)      # (1, TC)

    # Slice this row-tile's bias out of the resident bias block.
    r0 = pl.multiple_of(pl.program_id(1) * row_tile, row_tile)
    bias = bias_ref[pl.ds(r0, row_tile), :]                              # (TR, 1)

    # (1, TC) + (TR, 1) -> (TR, TC), stored lane-dense (unmasked vst).
    out_ref[...] = dot + bias


def _round_up(x, m):
    return ((x + m - 1) // m) * m


def _choose_tiles(B, target_tile_bytes=4 * 1024 * 1024, max_tc=2048, max_tr=512):
    """Pick lane-dense (TR, TC) output tiles and padded extents for batch B."""
    # Column (lane) tile: as wide as possible, multiple of 128, capped so the
    # double-buffered footprint stays well inside VMEM on every generation.
    n_c = pl.cdiv(_round_up(B, 128), max_tc)
    tc = _round_up(pl.cdiv(B, n_c), 128)
    b_pad_c = n_c * tc
    # Row (sublane) tile: aim for ~target_tile_bytes of f32 output per tile.
    tr = max(8, min(max_tr,
                    _round_up(B, 8),
                    (target_tile_bytes // (4 * tc)) // 8 * 8))
    b_pad_r = _round_up(B, tr)
    return tr, tc, b_pad_r, b_pad_c


def bilinear_forward(user_repr, user_bias, item_repr, item_bias):
    """Pallas-backed equivalent of BilinearNet.forward (literal PyTorch broadcast)."""
    B, D = user_repr.shape
    tr, tc, b_pad_r, b_pad_c = _choose_tiles(B)
    n_c = b_pad_c // tc
    n_r = b_pad_r // tr

    # Transpose so the embedding dim sits on sublanes and the batch (= output
    # column) dim sits on lanes; pad columns up to the lane-tile boundary.
    u_t = user_repr.astype(jnp.float32).T      # (D, B)
    i_t = item_repr.astype(jnp.float32).T      # (D, B)
    if b_pad_c != B:
        u_t = jnp.pad(u_t, ((0, 0), (0, b_pad_c - B)))
        i_t = jnp.pad(i_t, ((0, 0), (0, b_pad_c - B)))

    # Fold the two per-row biases into one stream; pad rows to the row tile.
    bias = (user_bias.astype(jnp.float32)
            + item_bias.astype(jnp.float32)).reshape(-1, 1)
    if b_pad_r != B:
        bias = jnp.pad(bias, ((0, b_pad_r - B), (0, 0)))

    out = pl.pallas_call(
        functools.partial(_bilinear_forward_kernel, row_tile=tr),
        out_shape=jax.ShapeDtypeStruct((b_pad_r, b_pad_c), jnp.float32),
        grid_spec=pltpu.PrefetchScalarGridSpec(
            num_scalar_prefetch=0,
            # Columns outer, rows inner: the (D, TC) slabs keep a constant
            # block index across the inner row axis, so they are DMA'd once
            # per column stripe.  No cross-step state -> both axes parallel.
            grid=(n_c, n_r),
            in_specs=[
                pl.BlockSpec((D, tc), lambda c, r: (0, c)),       # user slab
                pl.BlockSpec((D, tc), lambda c, r: (0, c)),       # item slab
                pl.BlockSpec((b_pad_r, 1), lambda c, r: (0, 0)),  # resident bias
            ],
            out_specs=pl.BlockSpec((tr, tc), lambda c, r: (r, c)),
        ),
        compiler_params=pltpu.CompilerParams(
            dimension_semantics=("parallel", "parallel"),
            # Above the 16 MiB v5e scoped default; within v7x's 64 MiB physical.
            vmem_limit_bytes=48 * 1024 * 1024,
        ),
    )(u_t, i_t, bias)

    if (b_pad_r, b_pad_c) != (B, B):
        out = out[:B, :B]
    return out


# ----------------------------------------------------------------------------
# BilinearNet parameters + representation glue (plain JAX)
# ----------------------------------------------------------------------------
class BilinearNetPallas:
    def __init__(self, num_users, num_items, embedding_dim=32, *, key):
        self.embedding_dim = embedding_dim
        ku, ki = jax.random.split(key)
        # ScaledEmbedding: weight ~ Normal(0, 1/embedding_dim)
        self.user_embeddings = (
            jax.random.normal(ku, (num_users, embedding_dim), jnp.float32)
            / embedding_dim)
        self.item_embeddings = (
            jax.random.normal(ki, (num_items, embedding_dim), jnp.float32)
            / embedding_dim)
        # ZeroEmbedding: zero-initialized biases
        self.user_biases = jnp.zeros((num_users, 1), jnp.float32)
        self.item_biases = jnp.zeros((num_items, 1), jnp.float32)

    # TODO(synk): embedding gathers stay as plain-JAX jnp.take; fusing them via
    # PrefetchScalarGridSpec row-gather does not line up with the (D, TC) slab
    # tiling used by the forward kernel.
    def user_representation(self, user_ids):
        emb = jnp.take(self.user_embeddings, user_ids, axis=0)
        emb = emb.reshape(-1, self.embedding_dim)
        bias = jnp.take(self.user_biases, user_ids, axis=0).reshape(-1, 1)
        return emb, bias

    def item_representation(self, item_ids):
        emb = jnp.take(self.item_embeddings, item_ids, axis=0)
        emb = emb.reshape(-1, self.embedding_dim)
        bias = jnp.take(self.item_biases, item_ids, axis=0).reshape(-1, 1)
        return emb, bias

    def forward(self, user_repr, user_bias, item_repr, item_bias):
        return bilinear_forward(user_repr, user_bias, item_repr, item_bias)


def _reference_forward(user_repr, user_bias, item_repr, item_bias):
    # Pure-JAX reference reproducing the PyTorch broadcasting.
    dot = jnp.sum(user_repr * item_repr, axis=1)   # (B,)
    return dot + user_bias + item_bias             # (B,) + (B,1) + (B,1) -> (B,B)


if __name__ == "__main__":
    num_users, num_items = 16, 24
    embedding_dim = 32
    batch = 8

    key = jax.random.PRNGKey(0)
    k_model, k_u, k_i = jax.random.split(key, 3)

    net = BilinearNetPallas(num_users, num_items, embedding_dim, key=k_model)

    user_ids = jax.random.randint(k_u, (batch,), 0, num_users)
    item_ids = jax.random.randint(k_i, (batch,), 0, num_items)

    u_repr, u_bias = net.user_representation(user_ids)
    i_repr, i_bias = net.item_representation(item_ids)

    out = net.forward(u_repr, u_bias, i_repr, i_bias)
    out = jax.block_until_ready(out)

    ref = _reference_forward(u_repr, u_bias, i_repr, i_bias)
    assert out.shape == (batch, batch), out.shape
    assert jnp.allclose(out, ref, atol=1e-5, rtol=1e-5), "mismatch vs reference"

    # Exercise the padded / non-divisible path too (B not a multiple of 128).
    kb = jax.random.PRNGKey(1)
    ku2, ki2, kub, kib = jax.random.split(kb, 4)
    Bb = 300
    u2 = jax.random.normal(ku2, (Bb, embedding_dim), jnp.float32)
    i2 = jax.random.normal(ki2, (Bb, embedding_dim), jnp.float32)
    ub2 = jax.random.normal(kub, (Bb, 1), jnp.float32)
    ib2 = jax.random.normal(kib, (Bb, 1), jnp.float32)
    out2 = jax.block_until_ready(bilinear_forward(u2, ub2, i2, ib2))
    ref2 = _reference_forward(u2, ub2, i2, ib2)
    assert out2.shape == (Bb, Bb), out2.shape
    assert jnp.allclose(out2, ref2, atol=1e-4, rtol=1e-4), "mismatch vs reference (padded)"

    print("KERNEL_OK")
</pallas_src>

<mosaic_0001>
module attributes {stable_mosaic.version = 11 : i64} {
  func.func @_bilinear_forward_kernel(%arg0: i32, %arg1: i32, %arg2: memref<32x128xf32, #tpu.memory_space<vmem>>, %arg3: memref<32x128xf32, #tpu.memory_space<vmem>>, %arg4: memref<8x1xf32, #tpu.memory_space<vmem>>, %arg5: memref<8x128xf32, #tpu.memory_space<vmem>>) attributes {dimension_semantics = [#tpu.dimension_semantics<parallel>, #tpu.dimension_semantics<parallel>], iteration_bounds = array<i64: 1, 1>, scalar_prefetch = 0 : i64, scratch_operands = 0 : i64, tpu.core_type = #tpu.core_type<tc>, window_params = [{transform_indices = @transform_0, window_bounds = array<i64: 32, 128>}, {transform_indices = @transform_1, window_bounds = array<i64: 32, 128>}, {pipeline_mode = #tpu.pipeline_mode<synchronous>, transform_indices = @transform_2, window_bounds = array<i64: 8, 1>}, {transform_indices = @transform_3, window_bounds = array<i64: 8, 128>}]} {
    %c0 = arith.constant 0 : index
    %c0_0 = arith.constant 0 : index
    %0 = vector.load %arg2[%c0, %c0_0] : memref<32x128xf32, #tpu.memory_space<vmem>>, vector<32x128xf32>
    %c0_1 = arith.constant 0 : index
    %c0_2 = arith.constant 0 : index
    %1 = vector.load %arg3[%c0_1, %c0_2] : memref<32x128xf32, #tpu.memory_space<vmem>>, vector<32x128xf32>
    %2 = arith.mulf %0, %1 : vector<32x128xf32>
    %cst = arith.constant dense<0.000000e+00> : vector<128xf32>
    %3 = vector.multi_reduction <add>, %2, %cst [0] : vector<32x128xf32> to vector<128xf32>
    %4 = vector.shape_cast %3 : vector<128xf32> to vector<1x128xf32>
    %c8_i32 = arith.constant 8 : i32
    %5 = arith.muli %arg1, %c8_i32 : i32
    %6 = tpu.assume_multiple %5, 8 : i32
    %7 = arith.index_cast %6 : i32 to index
    %c0_3 = arith.constant 0 : index
    %8 = vector.load %arg4[%7, %c0_3] : memref<8x1xf32, #tpu.memory_space<vmem>>, vector<8x1xf32>
    %9 = vector.broadcast %4 : vector<1x128xf32> to vector<8x128xf32>
    %10 = vector.broadcast %8 : vector<8x1xf32> to vector<8x128xf32>
    %11 = arith.addf %9, %10 : vector<8x128xf32>
    %c0_4 = arith.constant 0 : index
    %c0_5 = arith.constant 0 : index
    %12 = vector.load %arg5[%c0_4, %c0_5] : memref<8x128xf32, #tpu.memory_space<vmem>>, vector<8x128xf32>
    tpu.vector_store %arg5[%c0_4, %c0_5], %11 {strides = array<i32>} : memref<8x128xf32, #tpu.memory_space<vmem>>, vector<8x128xf32>,
    return
  }
  func.func @transform_0(%arg0: i32, %arg1: i32) -> (i32, i32) {
    %c0_i32 = arith.constant 0 : i32
    %c0_i32_0 = arith.constant 0 : i32
    return %c0_i32, %arg0 : i32, i32
  }
  func.func @transform_1(%arg0: i32, %arg1: i32) -> (i32, i32) {
    %c0_i32 = arith.constant 0 : i32
    %c0_i32_0 = arith.constant 0 : i32
    return %c0_i32, %arg0 : i32, i32
  }
  func.func @transform_2(%arg0: i32, %arg1: i32) -> (i32, i32) {
    %c0_i32 = arith.constant 0 : i32
    %c0_i32_0 = arith.constant 0 : i32
    %c0_i32_1 = arith.constant 0 : i32
    return %c0_i32, %c0_i32_0 : i32, i32
  }
  func.func @transform_3(%arg0: i32, %arg1: i32) -> (i32, i32) {
    %c0_i32 = arith.constant 0 : i32
    return %arg1, %arg0 : i32, i32
  }
}

</mosaic_0001>

<bundles_post_ra>
// kernel: tpu_custom_call.1
= control target key start
LH: loop header
LB: loop body
LE: loop exit
PB: predicated region body
PF: predicated region fallthrough
CT: control target
= control target key end

     0   :  { %8 = vsyncpa [#allocation3], 0  ;;  %s234_s0 = inlined_call_operand.hbm [shape: f32[32,128], index: 0, kind: input, shape index: {}]   ;;  %s235_s1 = inlined_call_operand.hbm [shape: f32[32,128], index: 1, kind: input, shape index: {}]   ;;  %s236_s2 = inlined_call_operand.vmem [shape: f32[8,1], index: 2, kind: input, shape index: {}]   ;;  %s237_s3 = inlined_call_operand.hbm [shape: f32[8,128], index: 3, kind: output, shape index: {}]  }
   0x1   :  { %9 = vsyncpa [#allocation6], 0 }
   0x2   :  { %10 = vsyncpa [#allocation4], 0  ;;  %s169_s12 = smov [#allocation2]   ;;  %s97_s16 = scalar_lea.hbm %s234_s0, 512 }
   0x3   :  { %s16_s13 = sshll.u32 %s169_s12, 4  ;;  %p98_p0 = scmp.ne.s32.totalorder %s234_s0, %s97_s16  ;;  %s17_s13 = int_to_ptr.vmem [resolvable:$true] %s16_s13 }
   0x4   :  { %p101_p1 = scmp.lt.u32.totalorder %s97_s16, %s234_s0 }
   0x6   :  { %p103_p2 = pnand %p101_p1, %p98_p0 }
   0x8   :  { %106 = shalt.err (!%p103_p2)
}
   0x9   :  { %s107_s21 = scalar_lea.vmem %s17_s13, 512  ;;  %p112_p4 = scmp.lt.s32.totalorder %s17_s13, %s17_s13 }
   0xa   :  { %p108_p3 = scmp.ne.s32.totalorder %s17_s13, %s107_s21  ;;  %p113_p5 = scmp.lt.s32.totalorder %s107_s21, %s107_s21 }
   0xc   :  { %p114_p6 = por %p113_p5, %p112_p4 }
   0xe   :  { %p115_p7 = pnand %p114_p6, %p108_p3 }
  0x10   :  { %118 = shalt.err (!%p115_p7)
}
  0x11   :  { %s170_s22 = smov 128   ;;  %s171_s23 = smov 8  }
  0x12   :  { %22 = dma.hbm_to_vmem [thread:$0]  %s234_s0, 512, %s17_s13, [#allocation3], %s170_s22, %s170_s22, %s171_s23  }
  0x13   :  { %s172_s26 = smov [#allocation5]   ;;  %s119_s30 = scalar_lea.hbm %s235_s1, 512 }
  0x14   :  { %s28_s27 = sshll.u32 %s172_s26, 4  ;;  %p120_p8 = scmp.ne.s32.totalorder %s235_s1, %s119_s30  ;;  %s29_s27 = int_to_ptr.vmem [resolvable:$true] %s28_s27 }
  0x15   :  { %p123_p9 = scmp.lt.u32.totalorder %s119_s30, %s235_s1 }
  0x17   :  { %p125_p10 = pnand %p123_p9, %p120_p8 }
  0x19   :  { %128 = shalt.err (!%p125_p10)
}
  0x1a   :  { %s129_s8 = scalar_lea.vmem %s29_s27, 512  ;;  %p134_p12 = scmp.lt.s32.totalorder %s29_s27, %s29_s27 }
  0x1b   :  { %p130_p11 = scmp.ne.s32.totalorder %s29_s27, %s129_s8  ;;  %p135_p13 = scmp.lt.s32.totalorder %s129_s8, %s129_s8 }
  0x1d   :  { %p136_p0 = por %p135_p13, %p134_p12 }
  0x1f   :  { %p137_p1 = pnand %p136_p0, %p130_p11 }
  0x21   :  { %140 = shalt.err (!%p137_p1)
}
  0x22   :  { %34 = dma.hbm_to_vmem [thread:$0]  %s235_s1, 512, %s29_s27, [#allocation6], %s170_s22, %s170_s22, %s171_s23  }
  0x23   :  { %163 = dma.done.wait [#allocation3], 512  }
  0x24   :  { %164 = vsyncadd [#allocation3], 4294966784 }
  0x25   :  { %165 = dma.done.wait [#allocation6], 512  }
  0x26   :  { %166 = vsyncadd [#allocation6], 4294966784  ;;  %v173_v0 = vmov 0   ;;  %v66_v1 = vld [vmem:[%s236_s2] sm:$0xff]  ;;  %v44_v3 = vld [vmem:[#allocation2 + $0x8] sm:$0xff]  ;;  %s174_s1 = smov [#allocation7]  }
  0x27   :  { %96 = vset.pattern.permute.xlu0 %v173_v0  ;;  %v43_v2 = vld [vmem:[#allocation2] sm:$0xff]  ;;  %v48_v5 = vld [vmem:[#allocation5 + $0x8] sm:$0xff]  ;;  %v45_v8 = vld [vmem:[#allocation2 + $0x10] sm:$0xff]  ;;  %s80_s2 = sshll.u32 %s174_s1, 4  ;;  %s81_s2 = int_to_ptr.vmem [resolvable:$true] %s80_s2 }
  0x28   :  { %69 = vperm.xlu0 %96, %v66_v1   ;;  %v47_v4 = vld [vmem:[#allocation5] sm:$0xff]  ;;  %v52_v7 = vmul.f32 %v48_v5, %v44_v3  ;;  %v49_v9 = vld [vmem:[#allocation5 + $0x10] sm:$0xff]  ;;  %v46_v12 = vld [vmem:[#allocation2 + $0x18] sm:$0xff]  ;;  %s141_s12 = scalar_lea.vmem %s81_s2, 128  ;;  %p146_p3 = scmp.lt.s32.totalorder %s81_s2, %s81_s2 }
  0x29   :  { %v51_v6 = vmul.f32 %v47_v4, %v43_v2  ;;  %v53_v10 = vmul.f32 %v49_v9, %v45_v8  ;;  %v50_v13 = vld [vmem:[#allocation5 + $0x18] sm:$0xff]  ;;  %p142_p2 = scmp.ne.s32.totalorder %s81_s2, %s141_s12  ;;  %p147_p4 = scmp.lt.s32.totalorder %s141_s12, %s141_s12 }
  0x2a   :  { %v54_v14 = vmul.f32 %v50_v13, %v46_v12 }
  0x2b   :  { %v55_v11 = vadd.f32 %v52_v7, %v51_v6  ;;  %p148_p5 = por %p147_p4, %p146_p3 }
  0x2d   :  { %v56_v15 = vadd.f32 %v55_v11, %v53_v10  ;;  %p149_p6 = pnand %p148_p5, %p142_p2 }
  0x2f   :  { %v57_v16 = vadd.f32 %v56_v15, %v54_v14 }
  0x31   :  { %v58_v17 = vrot.slane %v57_v16, 4 }
  0x33   :  { %v59_v18 = vadd.f32 %v58_v17, %v57_v16 }
  0x35   :  { %v60_v19 = vrot.slane %v59_v18, 2 }
  0x37   :  { %v61_v20 = vadd.f32 %v60_v19, %v59_v18 }
  0x39   :  { %v62_v21 = vrot.slane %v61_v20, 1 }
  0x3b   :  { %v63_v22 = vadd.f32 %v62_v21, %v61_v20 }
  0xa7   :  { %v70_v23 = vpop.permute.xlu0 %69 }
  0xa8   :  { %v72_v24 = vadd.f32 %v70_v23, %v63_v22 }
  0xaa   :  { %73 = vst [vmem:[#allocation7] sm:$0xff] %v72_v24 }
  0xab   :  { %152 = shalt.err (!%p149_p6)
}
  0xac   :  { %s153_s15 = scalar_lea.hbm %s237_s3, 128 }
  0xad   :  { %p154_p7 = scmp.ne.s32.totalorder %s237_s3, %s153_s15  ;;  %p157_p8 = scmp.lt.u32.totalorder %s153_s15, %s237_s3 }
  0xaf   :  { %p159_p9 = pnand %p157_p8, %p154_p7 }
  0xb1   :  { %162 = shalt.err (!%p159_p9)
}
  0xb2   :  { %83 = dma.vmem_to_hbm [thread:$0]  %s81_s2, 128, %s237_s3, [#allocation4]  }
  0xb3   :  { %167 = dma.done.wait [#allocation4], 128  }
  0xb4   :  { %168 = vsyncadd [#allocation4], 4294967168 }
  0xb5   :  { %87 = vsyncpa [#allocation3], 1 }
  0xb6   :  { %88 = vsyncpa [#allocation6], 1 }
  0xb7   :  { %89 = vsyncpa [#allocation4], 1 }

</bundles_post_ra>
